<compile_context>
chip_gen: v7x
topology: tpu7x:2x2x1
jax: 0.10.0
libtpu: 0.0.40
codegen_flags: <defaults>
</compile_context>

<pallas_src>
import functools

import jax
import jax.numpy as jnp
from jax import lax
from jax.experimental import pallas as pl
from jax.experimental.pallas import tpu as pltpu


# ---------------------------------------------------------------------------
# Fused Pallas kernel
# ---------------------------------------------------------------------------

def _fused_dnet_kernel(x_ref, w1_ref, b1_ref, w2_ref, b2_ref, w3_ref, b3_ref,
                       out_ref, h1pad_ref, *, H, W, P):
    """conv3x3+ReLU -> conv3x3+ReLU -> conv1x1 -> activation_G, one image/step.

    Layout: channels in sublanes, flat pixel index (H*W) in lanes.

    x_ref    : (1, Cpad, HW + 2P) f32, zero channel-pad + zero lane halos.
    w1_ref   : (Chid, 9*Cpad) bf16  tap-major contraction dim (tap*Cpad + c).
    w2_ref   : (Chid, 9*Chid) bf16
    w3_ref   : (2, Chid)      bf16
    b1_ref   : (Chid, 1) f32   b2_ref : (Chid, 1) f32   b3_ref : (2, 1) f32
    out_ref  : (1, 2, HW) f32  lane-dense N,C,(H*W) output block.
    h1pad_ref: VMEM scratch (Chid, HW + 2P) f32 for the haloed hidden layer.
    """
    HW = H * W
    Chid = h1pad_ref.shape[0]

    # Edge-wrap masks for the dx = -1 / +1 taps, built in-kernel and reused
    # by both conv layers.  col = within-row pixel column of each lane.
    col = lax.broadcasted_iota(jnp.int32, (1, HW), 1) % W
    m_left = (col > 0).astype(jnp.float32)        # left neighbour exists
    m_right = (col < W - 1).astype(jnp.float32)   # right neighbour exists

    def conv3x3_relu(slab, w_ref, b_ref):
        """3x3 'same' conv as ONE (Cout, 9C) x (9C, HW) MXU matmul."""
        taps = []
        for dy in (-1, 0, 1):
            for dx in (-1, 0, 1):
                off = P + dy * W + dx                  # static lane offset
                patch = slab[:, off:off + HW]          # (C, HW) shifted view
                if dx == -1:
                    patch = patch * m_left             # kill flat-row wrap
                elif dx == 1:
                    patch = patch * m_right
                taps.append(patch)
        xk = jnp.concatenate(taps, axis=0).astype(jnp.bfloat16)   # (9C, HW)
        acc = jnp.dot(w_ref[...], xk, preferred_element_type=jnp.float32)
        return jnp.maximum(acc + b_ref[...], 0.0)      # (Cout, HW) f32

    # --- layer 1: 3x3 conv + ReLU (Cpad -> Chid) ---------------------------
    h1 = conv3x3_relu(x_ref[0], w1_ref, b1_ref)        # (Chid, HW)

    # Stage haloed h1 in VMEM scratch; re-zero ONLY the two P-lane halos.
    h1pad_ref[:, 0:P] = jnp.zeros((Chid, P), jnp.float32)
    h1pad_ref[:, P + HW:] = jnp.zeros((Chid, P), jnp.float32)
    h1pad_ref[:, P:P + HW] = h1

    # --- layer 2: 3x3 conv + ReLU (Chid -> Chid) ---------------------------
    h2 = conv3x3_relu(h1pad_ref[...], w2_ref, b2_ref)  # (Chid, HW)

    # --- layer 3: 1x1 conv -> (2, HW): HW in lanes, lane-dense store -------
    y = jnp.dot(w3_ref[...], h2.astype(jnp.bfloat16),
                preferred_element_type=jnp.float32)    # (2, HW)
    y = y + b3_ref[...]

    # --- activation_G epilogue ---------------------------------------------
    # var = elu(v) + 1 + 1e-10 == (v + 1 if v > 0 else exp(v)) + 1e-10.
    # The 1e-10 is added AFTER the +1.0 so strict positivity survives f32
    # even when exp(v) underflows to 0.  Single fused (2, HW) store.
    var_all = jnp.where(y > 0, y + 1.0, jnp.exp(y)) + 1e-10
    row = lax.broadcasted_iota(jnp.int32, (2, HW), 0)
    out_ref[0] = jnp.where(row == 0, y, var_all)


# ---------------------------------------------------------------------------
# Host-facing wrapper (glue is layout plumbing only)
# ---------------------------------------------------------------------------

def _round_up(x, m):
    return ((x + m - 1) // m) * m


@jax.jit
def dnet_forward(img_nchw, params):
    """DNET.forward: activation_G(d_net(img)).  NCHW in -> NCHW (B, 2, H, W)."""
    B, Cin, H, W = img_nchw.shape
    HW = H * W
    P = _round_up(W + 1, 128)                  # lane-aligned flat halo, >= W+1
    Chid = params["w1"].shape[-1]
    Cpad = _round_up(Cin, 8)                   # sublane-aligned tap blocks

    # Glue: NCHW is already channels-major, so (B, C, H*W) is a free reshape;
    # pad channels to Cpad and add the P-lane zero halos (3->8 channels of a
    # single input read: negligible extra HBM traffic).
    x = img_nchw.reshape(B, Cin, HW)
    x = jnp.pad(x, ((0, 0), (0, Cpad - Cin), (P, P)))     # (B, Cpad, HW + 2P)

    def tap_major(w_hwio, ci, co):
        # (3,3,ci,co) HWIO -> (co, 9*ci); contraction index = tap*ci + c with
        # tap = ky*3 + kx, matching the in-kernel tap-concat order.
        return jnp.transpose(w_hwio.reshape(9, ci, co), (2, 0, 1)).reshape(co, 9 * ci)

    w1 = jnp.pad(params["w1"], ((0, 0), (0, 0), (0, Cpad - Cin), (0, 0)))
    w1 = tap_major(w1, Cpad, Chid).astype(jnp.bfloat16)         # (Chid, 9*Cpad)
    w2 = tap_major(params["w2"], Chid, Chid).astype(jnp.bfloat16)
    w3 = params["w3"].reshape(Chid, 2).T.astype(jnp.bfloat16)   # (2, Chid)
    b1 = params["b1"].reshape(Chid, 1)
    b2 = params["b2"].reshape(Chid, 1)
    b3 = params["b3"].reshape(2, 1)

    kernel = functools.partial(_fused_dnet_kernel, H=H, W=W, P=P)
    out_flat = pl.pallas_call(
        kernel,
        out_shape=jax.ShapeDtypeStruct((B, 2, HW), jnp.float32),
        grid=(B,),
        in_specs=[
            pl.BlockSpec((1, Cpad, HW + 2 * P), lambda b: (b, 0, 0)),
            pl.BlockSpec((Chid, 9 * Cpad), lambda b: (0, 0)),
            pl.BlockSpec((Chid, 1), lambda b: (0, 0)),
            pl.BlockSpec((Chid, 9 * Chid), lambda b: (0, 0)),
            pl.BlockSpec((Chid, 1), lambda b: (0, 0)),
            pl.BlockSpec((2, Chid), lambda b: (0, 0)),
            pl.BlockSpec((2, 1), lambda b: (0, 0)),
        ],
        out_specs=pl.BlockSpec((1, 2, HW), lambda b: (b, 0, 0)),
        scratch_shapes=[pltpu.VMEM((Chid, HW + 2 * P), jnp.float32)],
        compiler_params=pltpu.CompilerParams(
            dimension_semantics=("parallel",),     # B steps -> both v7x TCs
            vmem_limit_bytes=32 * 1024 * 1024),
    )(x, w1, b1, w2, b2, w3, b3)

    return out_flat.reshape(B, 2, H, W)            # free metadata reshape


# ---------------------------------------------------------------------------
# Deterministic stand-in weights + plain-XLA reference
# ---------------------------------------------------------------------------

def init_params(key, cin=3, hidden=16):
    k1, k2, k3, k4, k5, k6 = jax.random.split(key, 6)

    def conv_w(k, kh, kw, ci, co):
        fan_in = kh * kw * ci
        return (jax.random.normal(k, (kh, kw, ci, co), jnp.float32)
                / jnp.sqrt(float(fan_in)))

    return {
        "w1": conv_w(k1, 3, 3, cin, hidden),
        "b1": 0.1 * jax.random.normal(k2, (hidden,), jnp.float32),
        "w2": conv_w(k3, 3, 3, hidden, hidden),
        "b2": 0.1 * jax.random.normal(k4, (hidden,), jnp.float32),
        "w3": conv_w(k5, 1, 1, hidden, 2),
        "b3": 0.1 * jax.random.normal(k6, (2,), jnp.float32),
    }


def dnet_reference(img_nchw, params):
    """Plain-JAX/XLA reference for the stand-in d_net + activation_G."""
    x = jnp.transpose(img_nchw, (0, 2, 3, 1))

    def conv(h, w, b):
        y = lax.conv_general_dilated(
            h, w, window_strides=(1, 1), padding="SAME",
            dimension_numbers=("NHWC", "HWIO", "NHWC"))
        return y + b

    h = jnp.maximum(conv(x, params["w1"], params["b1"]), 0.0)
    h = jnp.maximum(conv(h, params["w2"], params["b2"]), 0.0)
    y = conv(h, params["w3"], params["b3"])            # (B, H, W, 2)
    mu = y[..., 0]
    v = y[..., 1]
    var = jnp.where(v > 0, v, jnp.expm1(v)) + 1.0 + 1e-10
    return jnp.stack([mu, var], axis=1)                # (B, 2, H, W)


if __name__ == "__main__":
    key = jax.random.PRNGKey(0)
    k_img, k_par = jax.random.split(key)

    B, C, H, W = 2, 3, 16, 16
    img = jax.random.normal(k_img, (B, C, H, W), jnp.float32)
    params = init_params(k_par, cin=C, hidden=16)

    out = jax.block_until_ready(dnet_forward(img, params))

    assert out.shape == (B, 2, H, W), out.shape
    # var channel must be strictly positive (elu(.) + 1 + 1e-10 > 0).
    assert bool(jnp.all(out[:, 1] > 0.0))
    # Structural check vs plain-XLA reference (loose tolerance: kernel uses
    # bf16 matmul operands with f32 accumulation).
    ref = dnet_reference(img, params)
    assert bool(jnp.all(jnp.abs(out - ref) <= 0.1 + 0.1 * jnp.abs(ref)))

    print("KERNEL_OK")
</pallas_src>

<mosaic_0001>
module attributes {stable_mosaic.version = 11 : i64} {
  func.func @_fused_dnet_kernel(%arg0: i32, %arg1: memref<1x8x512xf32, #tpu.memory_space<vmem>>, %arg2: memref<16x72xbf16, #tpu.memory_space<vmem>>, %arg3: memref<16x1xf32, #tpu.memory_space<vmem>>, %arg4: memref<16x144xbf16, #tpu.memory_space<vmem>>, %arg5: memref<16x1xf32, #tpu.memory_space<vmem>>, %arg6: memref<2x16xbf16, #tpu.memory_space<vmem>>, %arg7: memref<2x1xf32, #tpu.memory_space<vmem>>, %arg8: memref<1x2x256xf32, #tpu.memory_space<vmem>>, %arg9: memref<16x512xf32, #tpu.memory_space<vmem>>) attributes {dimension_semantics = [#tpu.dimension_semantics<parallel>], iteration_bounds = array<i64: 2>, scalar_prefetch = 0 : i64, scratch_operands = 1 : i64, tpu.core_type = #tpu.core_type<tc>, window_params = [{transform_indices = @transform_0, window_bounds = array<i64: 1, 8, 512>}, {pipeline_mode = #tpu.pipeline_mode<synchronous>, transform_indices = @transform_1, window_bounds = array<i64: 16, 72>}, {pipeline_mode = #tpu.pipeline_mode<synchronous>, transform_indices = @transform_2, window_bounds = array<i64: 16, 1>}, {pipeline_mode = #tpu.pipeline_mode<synchronous>, transform_indices = @transform_3, window_bounds = array<i64: 16, 144>}, {pipeline_mode = #tpu.pipeline_mode<synchronous>, transform_indices = @transform_4, window_bounds = array<i64: 16, 1>}, {pipeline_mode = #tpu.pipeline_mode<synchronous>, transform_indices = @transform_5, window_bounds = array<i64: 2, 16>}, {pipeline_mode = #tpu.pipeline_mode<synchronous>, transform_indices = @transform_6, window_bounds = array<i64: 2, 1>}, {transform_indices = @transform_7, window_bounds = array<i64: 1, 2, 256>}]} {
    %0 = tpu.iota {dimensions = array<i32: 1>} : vector<1x256xi32>
    %c16_i32 = arith.constant 16 : i32
    %c0_i32 = arith.constant 0 : i32
    %1 = arith.cmpi eq, %c16_i32, %c0_i32 : i32
    %c1_i32 = arith.constant 1 : i32
    %2 = arith.select %1, %c1_i32, %c16_i32 : i32
    %3 = vector.broadcast %2 : i32 to vector<1x256xi32>
    %4 = arith.remsi %0, %3 : vector<1x256xi32>
    %c0_i32_0 = arith.constant 0 : i32
    %5 = vector.broadcast %c0_i32_0 : i32 to vector<1x256xi32>
    %6 = arith.cmpi ne, %4, %5 : vector<1x256xi32>
    %c0_i32_1 = arith.constant 0 : i32
    %7 = vector.broadcast %c0_i32_1 : i32 to vector<1x256xi32>
    %8 = arith.cmpi slt, %4, %7 : vector<1x256xi32>
    %c0_i32_2 = arith.constant 0 : i32
    %9 = arith.cmpi slt, %2, %c0_i32_2 : i32
    %10 = vector.broadcast %9 : i1 to vector<1x256xi1>
    %11 = vector.broadcast %10 : vector<1x256xi1> to vector<1x256xi1>
    %12 = arith.xori %8, %11 : vector<1x256xi1>
    %13 = arith.andi %12, %6 : vector<1x256xi1>
    %14 = vector.broadcast %2 : i32 to vector<1x256xi32>
    %15 = arith.addi %4, %14 : vector<1x256xi32>
    %16 = arith.select %13, %15, %4 : vector<1x256xi1>, vector<1x256xi32>
    %c0_i32_3 = arith.constant 0 : i32
    %17 = vector.broadcast %c0_i32_3 : i32 to vector<1x256xi32>
    %18 = arith.cmpi sgt, %16, %17 : vector<1x256xi32>
    %19 = arith.extui %18 : vector<1x256xi1> to vector<1x256xi32>
    %20 = arith.sitofp %19 : vector<1x256xi32> to vector<1x256xf32>
    %c15_i32 = arith.constant 15 : i32
    %21 = vector.broadcast %c15_i32 : i32 to vector<1x256xi32>
    %22 = arith.cmpi slt, %16, %21 : vector<1x256xi32>
    %23 = arith.extui %22 : vector<1x256xi1> to vector<1x256xi32>
    %24 = arith.sitofp %23 : vector<1x256xi32> to vector<1x256xf32>
    %c0 = arith.constant 0 : index
    %c0_4 = arith.constant 0 : index
    %c0_5 = arith.constant 0 : index
    %25 = vector.load %arg1[%c0, %c0_4, %c0_5] : memref<1x8x512xf32, #tpu.memory_space<vmem>>, vector<1x8x512xf32>
    %26 = vector.shape_cast %25 : vector<1x8x512xf32> to vector<8x512xf32>
    %27 = vector.extract_strided_slice %26 {offsets = [0, 111], sizes = [8, 256], strides = [1, 1]} : vector<8x512xf32> to vector<8x256xf32>
    %28 = vector.broadcast %20 : vector<1x256xf32> to vector<8x256xf32>
    %29 = arith.mulf %27, %28 : vector<8x256xf32>
    %30 = vector.extract_strided_slice %26 {offsets = [0, 112], sizes = [8, 256], strides = [1, 1]} : vector<8x512xf32> to vector<8x256xf32>
    %31 = vector.extract_strided_slice %26 {offsets = [0, 113], sizes = [8, 256], strides = [1, 1]} : vector<8x512xf32> to vector<8x256xf32>
    %32 = vector.broadcast %24 : vector<1x256xf32> to vector<8x256xf32>
    %33 = arith.mulf %31, %32 : vector<8x256xf32>
    %34 = vector.extract_strided_slice %26 {offsets = [0, 127], sizes = [8, 256], strides = [1, 1]} : vector<8x512xf32> to vector<8x256xf32>
    %35 = vector.broadcast %20 : vector<1x256xf32> to vector<8x256xf32>
    %36 = arith.mulf %34, %35 : vector<8x256xf32>
    %37 = vector.extract_strided_slice %26 {offsets = [0, 128], sizes = [8, 256], strides = [1, 1]} : vector<8x512xf32> to vector<8x256xf32>
    %38 = vector.extract_strided_slice %26 {offsets = [0, 129], sizes = [8, 256], strides = [1, 1]} : vector<8x512xf32> to vector<8x256xf32>
    %39 = vector.broadcast %24 : vector<1x256xf32> to vector<8x256xf32>
    %40 = arith.mulf %38, %39 : vector<8x256xf32>
    %41 = vector.extract_strided_slice %26 {offsets = [0, 143], sizes = [8, 256], strides = [1, 1]} : vector<8x512xf32> to vector<8x256xf32>
    %42 = vector.broadcast %20 : vector<1x256xf32> to vector<8x256xf32>
    %43 = arith.mulf %41, %42 : vector<8x256xf32>
    %44 = vector.extract_strided_slice %26 {offsets = [0, 144], sizes = [8, 256], strides = [1, 1]} : vector<8x512xf32> to vector<8x256xf32>
    %45 = vector.extract_strided_slice %26 {offsets = [0, 145], sizes = [8, 256], strides = [1, 1]} : vector<8x512xf32> to vector<8x256xf32>
    %46 = vector.broadcast %24 : vector<1x256xf32> to vector<8x256xf32>
    %47 = arith.mulf %45, %46 : vector<8x256xf32>
    %48 = tpu.concatenate %29, %30, %33, %36, %37, %40, %43, %44, %47 in 0 : vector<8x256xf32>, vector<8x256xf32>, vector<8x256xf32>, vector<8x256xf32>, vector<8x256xf32>, vector<8x256xf32>, vector<8x256xf32>, vector<8x256xf32>, vector<8x256xf32> -> vector<72x256xf32>
    %49 = arith.truncf %48 : vector<72x256xf32> to vector<72x256xbf16>
    %c0_6 = arith.constant 0 : index
    %c0_7 = arith.constant 0 : index
    %50 = vector.load %arg2[%c0_6, %c0_7] : memref<16x72xbf16, #tpu.memory_space<vmem>>, vector<16x72xbf16>
    %cst = arith.constant dense<0.000000e+00> : vector<16x256xf32>
    %51 = tpu.matmul %50, %49, %cst {dimension_numbers = #tpu.dot_dimension_numbers<[1], [0], [0], [1], [0, 0, 1, 1], [], []>} : vector<16x72xbf16>, vector<72x256xbf16>, vector<16x256xf32> -> vector<16x256xf32>
    %c0_8 = arith.constant 0 : index
    %c0_9 = arith.constant 0 : index
    %52 = vector.load %arg3[%c0_8, %c0_9] : memref<16x1xf32, #tpu.memory_space<vmem>>, vector<16x1xf32>
    %53 = vector.broadcast %52 : vector<16x1xf32> to vector<16x256xf32>
    %54 = arith.addf %51, %53 : vector<16x256xf32>
    %cst_10 = arith.constant 0.000000e+00 : f32
    %55 = vector.broadcast %cst_10 : f32 to vector<16x256xf32>
    %56 = arith.maximumf %54, %55 : vector<16x256xf32>
    %cst_11 = arith.constant 0.000000e+00 : f32
    %57 = vector.broadcast %cst_11 : f32 to vector<16x128xf32>
    %c0_12 = arith.constant 0 : index
    %c0_13 = arith.constant 0 : index
    %58 = vector.load %arg9[%c0_12, %c0_13] : memref<16x512xf32, #tpu.memory_space<vmem>>, vector<16x128xf32>
    tpu.vector_store %arg9[%c0_12, %c0_13], %57 {strides = array<i32>} : memref<16x512xf32, #tpu.memory_space<vmem>>, vector<16x128xf32>,
    %cst_14 = arith.constant 0.000000e+00 : f32
    %59 = vector.broadcast %cst_14 : f32 to vector<16x128xf32>
    %c0_15 = arith.constant 0 : index
    %c384 = arith.constant 384 : index
    %60 = vector.load %arg9[%c0_15, %c384] : memref<16x512xf32, #tpu.memory_space<vmem>>, vector<16x128xf32>
    tpu.vector_store %arg9[%c0_15, %c384], %59 {strides = array<i32>} : memref<16x512xf32, #tpu.memory_space<vmem>>, vector<16x128xf32>,
    %c0_16 = arith.constant 0 : index
    %c128 = arith.constant 128 : index
    %61 = vector.load %arg9[%c0_16, %c128] : memref<16x512xf32, #tpu.memory_space<vmem>>, vector<16x256xf32>
    tpu.vector_store %arg9[%c0_16, %c128], %56 {strides = array<i32>} : memref<16x512xf32, #tpu.memory_space<vmem>>, vector<16x256xf32>,
    %c0_17 = arith.constant 0 : index
    %c0_18 = arith.constant 0 : index
    %62 = vector.load %arg9[%c0_17, %c0_18] : memref<16x512xf32, #tpu.memory_space<vmem>>, vector<16x512xf32>
    %63 = vector.extract_strided_slice %62 {offsets = [0, 111], sizes = [16, 256], strides = [1, 1]} : vector<16x512xf32> to vector<16x256xf32>
    %64 = vector.broadcast %20 : vector<1x256xf32> to vector<16x256xf32>
    %65 = arith.mulf %63, %64 : vector<16x256xf32>
    %66 = vector.extract_strided_slice %62 {offsets = [0, 112], sizes = [16, 256], strides = [1, 1]} : vector<16x512xf32> to vector<16x256xf32>
    %67 = vector.extract_strided_slice %62 {offsets = [0, 113], sizes = [16, 256], strides = [1, 1]} : vector<16x512xf32> to vector<16x256xf32>
    %68 = vector.broadcast %24 : vector<1x256xf32> to vector<16x256xf32>
    %69 = arith.mulf %67, %68 : vector<16x256xf32>
    %70 = vector.extract_strided_slice %62 {offsets = [0, 127], sizes = [16, 256], strides = [1, 1]} : vector<16x512xf32> to vector<16x256xf32>
    %71 = vector.broadcast %20 : vector<1x256xf32> to vector<16x256xf32>
    %72 = arith.mulf %70, %71 : vector<16x256xf32>
    %73 = vector.extract_strided_slice %62 {offsets = [0, 128], sizes = [16, 256], strides = [1, 1]} : vector<16x512xf32> to vector<16x256xf32>
    %74 = vector.extract_strided_slice %62 {offsets = [0, 129], sizes = [16, 256], strides = [1, 1]} : vector<16x512xf32> to vector<16x256xf32>
    %75 = vector.broadcast %24 : vector<1x256xf32> to vector<16x256xf32>
    %76 = arith.mulf %74, %75 : vector<16x256xf32>
    %77 = vector.extract_strided_slice %62 {offsets = [0, 143], sizes = [16, 256], strides = [1, 1]} : vector<16x512xf32> to vector<16x256xf32>
    %78 = vector.broadcast %20 : vector<1x256xf32> to vector<16x256xf32>
    %79 = arith.mulf %77, %78 : vector<16x256xf32>
    %80 = vector.extract_strided_slice %62 {offsets = [0, 144], sizes = [16, 256], strides = [1, 1]} : vector<16x512xf32> to vector<16x256xf32>
    %81 = vector.extract_strided_slice %62 {offsets = [0, 145], sizes = [16, 256], strides = [1, 1]} : vector<16x512xf32> to vector<16x256xf32>
    %82 = vector.broadcast %24 : vector<1x256xf32> to vector<16x256xf32>
    %83 = arith.mulf %81, %82 : vector<16x256xf32>
    %84 = tpu.concatenate %65, %66, %69, %72, %73, %76, %79, %80, %83 in 0 : vector<16x256xf32>, vector<16x256xf32>, vector<16x256xf32>, vector<16x256xf32>, vector<16x256xf32>, vector<16x256xf32>, vector<16x256xf32>, vector<16x256xf32>, vector<16x256xf32> -> vector<144x256xf32>
    %85 = arith.truncf %84 : vector<144x256xf32> to vector<144x256xbf16>
    %c0_19 = arith.constant 0 : index
    %c0_20 = arith.constant 0 : index
    %86 = vector.load %arg4[%c0_19, %c0_20] : memref<16x144xbf16, #tpu.memory_space<vmem>>, vector<16x144xbf16>
    %cst_21 = arith.constant dense<0.000000e+00> : vector<16x256xf32>
    %87 = tpu.matmul %86, %85, %cst_21 {dimension_numbers = #tpu.dot_dimension_numbers<[1], [0], [0], [1], [0, 0, 1, 1], [], []>} : vector<16x144xbf16>, vector<144x256xbf16>, vector<16x256xf32> -> vector<16x256xf32>
    %c0_22 = arith.constant 0 : index
    %c0_23 = arith.constant 0 : index
    %88 = vector.load %arg5[%c0_22, %c0_23] : memref<16x1xf32, #tpu.memory_space<vmem>>, vector<16x1xf32>
    %89 = vector.broadcast %88 : vector<16x1xf32> to vector<16x256xf32>
    %90 = arith.addf %87, %89 : vector<16x256xf32>
    %cst_24 = arith.constant 0.000000e+00 : f32
    %91 = vector.broadcast %cst_24 : f32 to vector<16x256xf32>
    %92 = arith.maximumf %90, %91 : vector<16x256xf32>
    %c0_25 = arith.constant 0 : index
    %c0_26 = arith.constant 0 : index
    %93 = vector.load %arg6[%c0_25, %c0_26] : memref<2x16xbf16, #tpu.memory_space<vmem>>, vector<2x16xbf16>
    %94 = arith.truncf %92 : vector<16x256xf32> to vector<16x256xbf16>
    %cst_27 = arith.constant dense<0.000000e+00> : vector<2x256xf32>
    %95 = tpu.matmul %93, %94, %cst_27 {dimension_numbers = #tpu.dot_dimension_numbers<[1], [0], [0], [1], [0, 0, 1, 1], [], []>} : vector<2x16xbf16>, vector<16x256xbf16>, vector<2x256xf32> -> vector<2x256xf32>
    %c0_28 = arith.constant 0 : index
    %c0_29 = arith.constant 0 : index
    %96 = vector.load %arg7[%c0_28, %c0_29] : memref<2x1xf32, #tpu.memory_space<vmem>>, vector<2x1xf32>
    %97 = vector.broadcast %96 : vector<2x1xf32> to vector<2x256xf32>
    %98 = arith.addf %95, %97 : vector<2x256xf32>
    %cst_30 = arith.constant 0.000000e+00 : f32
    %99 = vector.broadcast %cst_30 : f32 to vector<2x256xf32>
    %100 = arith.cmpf ogt, %98, %99 : vector<2x256xf32>
    %cst_31 = arith.constant 1.000000e+00 : f32
    %101 = vector.broadcast %cst_31 : f32 to vector<2x256xf32>
    %102 = arith.addf %98, %101 : vector<2x256xf32>
    %103 = math.exp %98 : vector<2x256xf32>
    %104 = arith.select %100, %102, %103 : vector<2x256xi1>, vector<2x256xf32>
    %cst_32 = arith.constant 1.000000e-10 : f32
    %105 = vector.broadcast %cst_32 : f32 to vector<2x256xf32>
    %106 = arith.addf %104, %105 : vector<2x256xf32>
    %107 = tpu.iota {dimensions = array<i32: 0>} : vector<2x256xi32>
    %c0_i32_33 = arith.constant 0 : i32
    %108 = vector.broadcast %c0_i32_33 : i32 to vector<2x256xi32>
    %109 = arith.cmpi eq, %107, %108 : vector<2x256xi32>
    %110 = arith.select %109, %98, %106 : vector<2x256xi1>, vector<2x256xf32>
    %c0_34 = arith.constant 0 : index
    %c0_35 = arith.constant 0 : index
    %c0_36 = arith.constant 0 : index
    %111 = vector.load %arg8[%c0_34, %c0_35, %c0_36] : memref<1x2x256xf32, #tpu.memory_space<vmem>>, vector<1x2x256xf32>
    %112 = vector.shape_cast %111 : vector<1x2x256xf32> to vector<2x256xf32>
    %113 = vector.shape_cast %110 : vector<2x256xf32> to vector<1x2x256xf32>
    tpu.vector_store %arg8[%c0_34, %c0_35, %c0_36], %113 {strides = array<i32>} : memref<1x2x256xf32, #tpu.memory_space<vmem>>, vector<1x2x256xf32>,
    return
  }
  func.func @transform_0(%arg0: i32) -> (i32, i32, i32) {
    %c0_i32 = arith.constant 0 : i32
    %c0_i32_0 = arith.constant 0 : i32
    %c0_i32_1 = arith.constant 0 : i32
    return %arg0, %c0_i32, %c0_i32_0 : i32, i32, i32
  }
  func.func @transform_1(%arg0: i32) -> (i32, i32) {
    %c0_i32 = arith.constant 0 : i32
    %c0_i32_0 = arith.constant 0 : i32
    %c0_i32_1 = arith.constant 0 : i32
    return %c0_i32, %c0_i32_0 : i32, i32
  }
  func.func @transform_2(%arg0: i32) -> (i32, i32) {
    %c0_i32 = arith.constant 0 : i32
    %c0_i32_0 = arith.constant 0 : i32
    %c0_i32_1 = arith.constant 0 : i32
    return %c0_i32, %c0_i32_0 : i32, i32
  }
  func.func @transform_3(%arg0: i32) -> (i32, i32) {
    %c0_i32 = arith.constant 0 : i32
    %c0_i32_0 = arith.constant 0 : i32
    %c0_i32_1 = arith.constant 0 : i32
    return %c0_i32, %c0_i32_0 : i32, i32
  }
  func.func @transform_4(%arg0: i32) -> (i32, i32) {
    %c0_i32 = arith.constant 0 : i32
    %c0_i32_0 = arith.constant 0 : i32
    %c0_i32_1 = arith.constant 0 : i32
    return %c0_i32, %c0_i32_0 : i32, i32
  }
  func.func @transform_5(%arg0: i32) -> (i32, i32) {
    %c0_i32 = arith.constant 0 : i32
    %c0_i32_0 = arith.constant 0 : i32
    %c0_i32_1 = arith.constant 0 : i32
    return %c0_i32, %c0_i32_0 : i32, i32
  }
  func.func @transform_6(%arg0: i32) -> (i32, i32) {
    %c0_i32 = arith.constant 0 : i32
    %c0_i32_0 = arith.constant 0 : i32
    %c0_i32_1 = arith.constant 0 : i32
    return %c0_i32, %c0_i32_0 : i32, i32
  }
  func.func @transform_7(%arg0: i32) -> (i32, i32, i32) {
    %c0_i32 = arith.constant 0 : i32
    %c0_i32_0 = arith.constant 0 : i32
    %c0_i32_1 = arith.constant 0 : i32
    return %arg0, %c0_i32, %c0_i32_0 : i32, i32, i32
  }
}

</mosaic_0001>

<bundles_post_ra>
// kernel: dnet_forward.1
= control target key start
LH: loop header
LB: loop body
LE: loop exit
PB: predicated region body
PF: predicated region fallthrough
CT: control target
= control target key end

     0   :  { %s1584_s24 = smov 0   ;;  %s1970_s0 = inlined_call_operand.vmem [shape: f32[2,8,512], index: 0, kind: input, shape index: {}]   ;;  %s1971_s1 = inlined_call_operand.vmem [shape: bf16[16,72], index: 1, kind: input, shape index: {}]   ;;  %s1972_s2 = inlined_call_operand.vmem [shape: f32[16,1], index: 2, kind: input, shape index: {}]   ;;  %s1973_s3 = inlined_call_operand.vmem [shape: bf16[16,144], index: 3, kind: input, shape index: {}]   ;;  %s1974_s4 = inlined_call_operand.vmem [shape: f32[16,1], index: 4, kind: input, shape index: {}]   ;;  %s1975_s5 = inlined_call_operand.vmem [shape: bf16[2,16], index: 5, kind: input, shape index: {}]   ;;  %s1976_s6 = inlined_call_operand.vmem [shape: f32[2,1], index: 6, kind: input, shape index: {}]   ;;  %s1977_s7 = inlined_call_operand.vmem [shape: f32[2,2,256], index: 7, kind: output, shape index: {}]  }
   0x1 LB: > { %s1280_s25 = sadd.s32 4294967295, %s1528_s24   ;;  %p1284_p0 = scmp.ge.s32.totalorder %s1528_s24, 1  ;;  %s1528_s24 = sphi %s1584_s24, %s17_s24  }
   0x2   : > { %p237_p1 = scmp.lt.s32.totalorder %s1528_s24, 3 }
   0x4   : > { %p238_p2 = pnand %p1284_p0, %p237_p1 }
   0x5   : > { %v280_v0 = vlaneseq (!%p238_p2)  ;;  %p269_p3 = scmp.lt.s32.totalorder (!%p238_p2), %s1280_s25, 1  ;;  %v1530_v5 = vmov (!%p238_p2), 0.0   ;;  %s1531_s27 = smov (!%p238_p2), 113   ;;  %vm343_vm4 = vcmask (!%p238_p2), 924672   ;;  %vm355_vm5 = vcmask (!%p238_p2), 1039360  }
   0x6   : > { %241 = sbr.rel (%p238_p2) target bundleno = 1383 (0x567), region = 48  ;;  %s1532_s28 = smov (!%p238_p2), 1   ;;  %vm367_vm6 = vcmask (!%p238_p2), 7168   ;;  %vm379_vm7 = vcmask (!%p238_p2), 121856   ;;  %vm391_vm8 = vcmask (!%p238_p2), 138240   ;;  %vm329_vm9 = vcmask (!%p238_p2), 908288  }
   0x7   : > { %v281_v1 = vand.u32 (!%p238_p2), 127, %v280_v0  ;;  %s1533_s9 = smov (!%p238_p2), 127   ;;  %s1534_s10 = smov (!%p238_p2), 15   ;;  %vm437_vm10 = vcmask (!%p238_p2), 916480   ;;  %vm422_vm11 = vcmask (!%p238_p2), 1031168   ;;  %vm460_vm12 = vcmask (!%p238_p2), 900096  }
   0x8   : > { %s1535_s11 = smov (!%p238_p2), 17   ;;  %s1536_s12 = smov (!%p238_p2), 111   ;;  %vm475_vm13 = vcmask (!%p238_p2), 785408   ;;  %vm488_vm14 = vcmask (!%p238_p2), 777216   ;;  %vm503_vm15 = vcmask (!%p238_p2), 769024  }
   0x9   : > { %v282_v2 = vadd.s32 (!%p238_p2), 128, %v281_v1  ;;  %v287_v3 = vand.u32 (!%p238_p2), 15, %v281_v1  ;;  %s1537_s13 = smov (!%p238_p2), 126   ;;  %s1538_s14 = smov (!%p238_p2), 112  }
   0xa   : > { %s1539_s15 = smov (!%p238_p2), 110   ;;  %s1540_s16 = smov (!%p238_p2), 95  }
   0xb   : > { %v294_v4 = vand.u32 (!%p238_p2), 15, %v282_v2  ;;  %vm313_vm0 = vcmp.lt.s32.totalorder (!%p238_p2), %v287_v3, 15  ;;  %vm307_vm1 = vcmp.gt.s32.totalorder (!%p238_p2), %v287_v3, 0  ;;  %s1541_s17 = smov (!%p238_p2), 96   ;;  %s1542_s18 = smov (!%p238_p2), 94  }
   0xc   : > { %v1291_v6 = vsel (!%p238_p2), %vm313_vm0, 1.0, %v1530_v5  ;;  %v1289_v8 = vsel (!%p238_p2), %vm307_vm1, 1.0, %v1530_v5  ;;  %vm611_vm0 = vcmask (!%p238_p2), 1043456   ;;  %vm607_vm1 = vcmask (!%p238_p2), 588800  }
   0xd   : > { %s1979_s25 = smov (!%p269_p3, %s1280_s25), 1  ;;  %vm314_vm2 = vcmp.lt.s32.totalorder %v294_v4, 15  ;;  %vm308_vm3 = vcmp.gt.s32.totalorder %v294_v4, 0 }
   0xe   : > { %v1292_v7 = vsel %vm314_vm2, 1.0, %v1530_v5  ;;  %v1290_v9 = vsel %vm308_vm3, 1.0, %v1530_v5  ;;  %s1303_s26 = sshll.u32 %s1979_s25, 5  ;;  %vm1092_vm2 = vcmask 130048  }
   0xf   : > { %v1327_v10 = vpack.i.bf16 %v1292_v7, %v1291_v6  ;;  %v1332_v11 = vpack.i.bf16 %v1290_v9, %v1289_v8  ;;  %s273_s8 = scalar_lea.vmem %s1970_s0, %s1303_s26 }
  0x10   : > { %v1604_v12 = vld [vmem:[%s273_s8 + $0x8] sm:$0xff]  ;;  %v1606_v13 = vld [vmem:[%s273_s8 + $0x10] sm:$0xff]  ;;  %v1612_v15 = vld [vmem:[%s273_s8] sm:$0xff] }
  0x11   : > { %1328 = vrot.lane.b32.xlu0 %v1327_v10, %s1531_s27  ;;  %1338 = vrot.lane.b32.xlu1 %v1327_v10, %s1532_s28  ;;  %v1352_v14 = vpack.i.bf16 %v1606_v13, %v1604_v12  ;;  %v322_v21 = vld [vmem:[%s273_s8 + $0x18] sm:$0xff] }
  0x15   : > { %1333 = vrot.lane.b32.xlu0 %v1332_v11, %s1533_s9  ;;  %1343 = vrot.lane.b32.xlu1 %v1332_v11, %s1534_s10 }
  0x19   : > { %1348 = vrot.lane.b32.xlu0 %v1327_v10, %s1535_s11  ;;  %1358 = vrot.lane.b32.xlu1 %v1332_v11, %s1536_s12  ;;  %v1543_v11 = vmov 0  }
  0x1a   : > { %1397 = vset.pattern.permute.xlu0 %v1543_v11  ;;  %1398 = vset.pattern.permute.xlu1 %v1543_v11 }
  0x1b   : > { %650 = vmatprep.mubr.bf16.mxu0 %v1543_v11 }
  0x1d   : > { %1353 = vrot.lane.b32.xlu0 %v1352_v14, %s1533_s9  ;;  %402 = vrot.lane.b32.xlu1 %v1612_v15, %s1533_s9 }
  0x21   : > { %1363 = vrot.lane.b32.xlu0 %v1352_v14, %s1536_s12 }
  0x83   : > { %v1329_v16 = vpop.permute.xlu0 %1328  ;;  %v1339_v17 = vpop.permute.xlu1 %1338 }
  0x84   : > { %v1618_v18 = vunpack.i.h.bf16 %v1329_v16  ;;  %v1620_v19 = vunpack.i.l.bf16 %v1329_v16  ;;  %v1622_v20 = vunpack.i.h.bf16 %v1339_v17  ;;  %v1636_v28 = vunpack.i.l.bf16 %v1339_v17 }
  0x86   : > { %v348_v22 = vmul.f32 %v1620_v19, %v1612_v15  ;;  %v1628_v23 = vsel %vm343_vm4, %v1620_v19, %v1618_v18  ;;  %v374_v27 = vmul.f32 %v1622_v20, %v322_v21  ;;  %v350_v32 = vmul.f32 %v1618_v18, %v1606_v13 }
  0x87   : > { %v1334_v24 = vpop.permute.xlu0 %1333  ;;  %v1344_v29 = vpop.permute.xlu1 %1343  ;;  %v349_v31 = vmul.f32 %v1628_v23, %v1604_v12  ;;  %v1657_v36 = vsel %vm367_vm6, %v1636_v28, %v1622_v20  ;;  %v372_v41 = vmul.f32 %v1636_v28, %v1604_v12 }
  0x88   : > { %v1630_v25 = vunpack.i.h.bf16 %v1334_v24  ;;  %v1632_v26 = vunpack.i.l.bf16 %v1334_v24  ;;  %416 = vrot.lane.b32.xlu0 %v348_v22, %s1537_s13  ;;  %v1651_v34 = vunpack.i.h.bf16 %v1344_v29  ;;  %v1653_v35 = vunpack.i.l.bf16 %v1344_v29 }
  0x89   : > { %v1367_v37 = vpack.i.bf16 %v350_v32, %v349_v31  ;;  %v373_v44 = vmul.f32 %v1657_v36, %v1606_v13 }
  0x8a   : > { %v360_v30 = vmul.f32 %v1632_v26, %v1612_v15  ;;  %v1647_v33 = vsel %vm355_vm5, %v1632_v26, %v1630_v25  ;;  %v362_v39 = vmul.f32 %v1630_v25, %v1606_v13  ;;  %v1667_v42 = vsel %vm379_vm7, %v1653_v35, %v1651_v34 }
  0x8b   : > { %v361_v38 = vmul.f32 %v1647_v33, %v1604_v12  ;;  %v1349_v40 = vpop.permute.xlu0 %1348  ;;  %v386_v43 = vmul.f32 %v1651_v34, %v322_v21  ;;  %v384_v48 = vmul.f32 %v1653_v35, %v1604_v12  ;;  %v385_v49 = vmul.f32 %v1667_v42, %v1606_v13  ;;  %v1359_v50 = vpop.permute.xlu1 %1358 }
  0x8c   : > { %431 = vrot.lane.b32.xlu1 %v360_v30, %s1538_s14  ;;  %458 = vrot.lane.b32.xlu0 %v374_v27, %s1539_s15  ;;  %v1674_v45 = vunpack.i.h.bf16 %v1349_v40  ;;  %v1676_v46 = vunpack.i.l.bf16 %v1349_v40  ;;  %v1382_v51 = vpack.i.bf16 %v373_v44, %v372_v41  ;;  %v1684_v52 = vunpack.i.h.bf16 %v1359_v50 }
  0x8d   : > { %v1377_v47 = vpack.i.bf16 %v362_v39, %v361_v38  ;;  %v1387_v55 = vpack.i.bf16 %v385_v49, %v384_v48  ;;  %v1692_v57 = vunpack.i.l.bf16 %v1359_v50 }
  0x8e   : > { %v1689_v53 = vsel %vm391_vm8, %v1676_v46, %v1674_v45  ;;  %v398_v56 = vmul.f32 %v1674_v45, %v322_v21  ;;  %v396_v58 = vmul.f32 %v1676_v46, %v1604_v12  ;;  %v336_v60 = vmul.f32 %v1684_v52, %v1606_v13 }
  0x8f   : > { %v1354_v54 = vpop.permute.xlu0 %1353  ;;  %v397_v59 = vmul.f32 %v1689_v53, %v1606_v13  ;;  %v403_v63 = vpop.permute.xlu1 %402  ;;  %v334_v3 = vmul.f32 %v1692_v57, %v1612_v15  ;;  %v1709_v4 = vsel %vm329_vm9, %v1692_v57, %v1684_v52 }
  0x90   : > { %1373 = vrot.lane.b32.xlu1 %v1352_v14, %s1540_s16  ;;  %1368 = vrot.lane.b32.xlu0 %v1367_v37, %s1537_s13  ;;  %v1356_v61 = vunpack.i.h.bf16 %v1354_v54  ;;  %v1355_v62 = vunpack.i.l.bf16 %v1354_v54  ;;  %v335_v8 = vmul.f32 %v1709_v4, %v1604_v12 }
  0x91   : > { %v1392_v1 = vpack.i.bf16 %v397_v59, %v396_v58 }
  0x92   : > { %v511_v2 = vpack.c.bf16 %v1356_v61, %v336_v60  ;;  %v408_v6 = vsel %vm355_vm5, %v403_v63, %v1355_v62  ;;  %v409_v9 = vsel %vm355_vm5, %v1355_v62, %v1356_v61 }
  0x93   : > { %v509_v7 = vpack.c.bf16 %v408_v6, %v334_v3  ;;  %v510_v10 = vpack.c.bf16 %v409_v9, %v335_v8  ;;  %v1364_v13 = vpop.permute.xlu0 %1363 }
  0x94   : > { %1378 = vrot.lane.b32.xlu1 %v1377_v47, %s1538_s14  ;;  %473 = vrot.lane.b32.xlu0 %v386_v43, %s1541_s17  ;;  %v1365_v27 = vunpack.i.l.bf16 %v1364_v13  ;;  %v1366_v60 = vunpack.i.h.bf16 %v1364_v13 }
  0x96   : > { %v447_v13 = vsel %vm329_vm9, %v1365_v27, %v1366_v60 }
  0x98   : > { %1383 = vrot.lane.b32.xlu1 %v1382_v51, %s1539_s15  ;;  %486 = vrot.lane.b32.xlu0 %v322_v21, %s1540_s16 }
  0x9c   : > { %1388 = vrot.lane.b32.xlu1 %v1387_v55, %s1541_s17  ;;  %501 = vrot.lane.b32.xlu0 %v398_v56, %s1542_s18 }
  0xa0   : > { %1393 = vrot.lane.b32.xlu1 %v1392_v1, %s1542_s18  ;;  %562 = vrot.lane.b32.xlu0 %v511_v2, %s1535_s11 }
  0xa4   : > { %558 = vrot.lane.b32.xlu1 %v509_v7, %s1535_s11 }
  0xa8   : > { %560 = vrot.lane.b32.xlu1 %v510_v10, %s1535_s11 }
  0xfa   : > { %v417_v14 = vpop.permute.xlu0 %416 }
  0xfe   : > { %v432_v15 = vpop.permute.xlu1 %431  ;;  %v459_v16 = vpop.permute.xlu0 %458 }
 0x102   : > { %v1722_v17 = vpop.permute.xlu1 %1373  ;;  %v1369_v12 = vpop.permute.xlu0 %1368 }
 0x103   : > { %v1375_v39 = vunpack.i.l.bf16 %v1722_v17  ;;  %v1371_v41 = vunpack.i.h.bf16 %v1369_v12  ;;  %v1370_v43 = vunpack.i.l.bf16 %v1369_v12  ;;  %v1376_v10 = vunpack.i.h.bf16 %v1722_v17 }
 0x105   : > { %v424_v51 = vsel %vm422_vm11, %v1370_v43, %v1371_v41  ;;  %v423_v61 = vsel %vm422_vm11, %v417_v14, %v1370_v43  ;;  %v489_v17 = vsel %vm488_vm14, %v1375_v39, %v1376_v10 }
 0x106   : > { %v1379_v21 = vpop.permute.xlu1 %1378  ;;  %v474_v22 = vpop.permute.xlu0 %473 }
 0x107   : > { %v1381_v31 = vunpack.i.h.bf16 %v1379_v21  ;;  %v1380_v32 = vunpack.i.l.bf16 %v1379_v21 }
 0x109   : > { %v439_v48 = vsel %vm437_vm10, %v1380_v32, %v1381_v31  ;;  %v438_v58 = vsel %vm437_vm10, %v432_v15, %v1380_v32  ;;  %v514_v63 = vpack.c.bf16 %v1381_v31, %v1371_v41  ;;  %v693_v41 = vmul.f32 0.0, %v1632_v26 }
 0x10a   : > { %v1384_v24 = vpop.permute.xlu1 %1383  ;;  %v487_v37 = vpop.permute.xlu0 %486  ;;  %v513_v55 = vpack.c.bf16 %v439_v48, %v424_v51  ;;  %v512_v1 = vpack.c.bf16 %v438_v58, %v423_v61 }
 0x10b   : > { %v1385_v29 = vunpack.i.l.bf16 %v1384_v24  ;;  %v1386_v56 = vunpack.i.h.bf16 %v1384_v24  ;;  %v490_v24 = vsel %vm488_vm14, %v1376_v10, %v487_v37  ;;  %v526_v37 = vld [vmem:[%s1972_s2] sm:$0xff]  ;;  %v1409_v43 = vpack.i.bf16 %v693_v41, %v693_v41 }
 0x10d   : > { %v515_v30 = vpack.c.bf16 %v1385_v29, %v1365_v27  ;;  %v462_v3 = vsel %vm460_vm12, %v1386_v56, %v459_v16  ;;  %v461_v6 = vsel %vm460_vm12, %v1385_v29, %v1386_v56 }
 0x10e   : > { %v1389_v38 = vpop.permute.xlu1 %1388  ;;  %v502_v50 = vpop.permute.xlu0 %501  ;;  %v517_v14 = vpack.c.bf16 %v462_v3, %v1366_v60  ;;  %v516_v15 = vpack.c.bf16 %v461_v6, %v447_v13 }
 0x10f   : > { %v1390_v40 = vunpack.i.l.bf16 %v1389_v38  ;;  %570 = vrot.lane.b32.xlu1 %v515_v30, %s1535_s11  ;;  %v1391_v2 = vunpack.i.h.bf16 %v1389_v38  ;;  %v527_v38 = vld [vmem:[%s1972_s2 + $0x8] sm:$0xff] }
 0x111   : > { %v518_v44 = vpack.c.bf16 %v1375_v39, %v1390_v40  ;;  %v476_v12 = vsel %vm475_vm13, %v1390_v40, %v1391_v2  ;;  %v477_v21 = vsel %vm475_vm13, %v1391_v2, %v474_v22  ;;  %v687_v39 = vmul.f32 0.0, %v1620_v19 }
 0x112   : > { %v1394_v47 = vpop.permute.xlu1 %1393  ;;  %v563_v62 = vpop.permute.xlu0 %562  ;;  %v519_v27 = vpack.c.bf16 %v489_v17, %v476_v12  ;;  %v520_v29 = vpack.c.bf16 %v490_v24, %v477_v21 }
 0x113   : > { %v1395_v49 = vunpack.i.l.bf16 %v1394_v47  ;;  %576 = vrot.lane.b32.xlu0 %v518_v44, %s1535_s11  ;;  %v1396_v16 = vunpack.i.h.bf16 %v1394_v47  ;;  %v1404_v40 = vpack.i.bf16 %v687_v39, %v687_v39 }
 0x115   : > { %v521_v54 = vpack.c.bf16 %v1395_v49, %v1395_v49  ;;  %v504_v30 = vsel %vm503_vm15, %v1395_v49, %v1396_v16  ;;  %v505_v31 = vsel %vm503_vm15, %v1396_v16, %v502_v50 }
 0x116   : > { %v559_v59 = vpop.permute.xlu1 %558  ;;  %v522_v22 = vpack.c.bf16 %v504_v30, %v504_v30  ;;  %v523_v32 = vpack.c.bf16 %v505_v31, %v505_v31 }
 0x117   : > { %566 = vrot.lane.b32.xlu0 %v513_v55, %s1535_s11  ;;  %582 = vrot.lane.b32.xlu1 %v521_v54, %s1535_s11 }
 0x11a   : > { %v561_v7 = vpop.permute.xlu1 %560 }
 0x11b   : > { %564 = vrot.lane.b32.xlu0 %v512_v1, %s1535_s11  ;;  %568 = vrot.lane.b32.xlu1 %v514_v63, %s1535_s11  ;;  %v590_v8 = vsel %vm391_vm8, %v561_v7, %v563_v62  ;;  %v589_v9 = vsel %vm391_vm8, %v559_v59, %v561_v7  ;;  %v1514_v7 = vld [vmem:[%s1971_s1] sm:$0xff]  }
 0x11c   : > { %618 = vmatprep.subr.bf16.mxu0 %v590_v8 }
 0x11d   : > { %619 = vmatpush1.bf16.msra.mxu0 %v589_v9 }
 0x11f   : > { %574 = vrot.lane.b32.xlu0 %v517_v14, %s1535_s11  ;;  %572 = vrot.lane.b32.xlu1 %v516_v15, %s1535_s11 }
 0x123   : > { %578 = vrot.lane.b32.xlu0 %v519_v27, %s1535_s11  ;;  %580 = vrot.lane.b32.xlu1 %v520_v29, %s1535_s11  ;;  %v701_v29 = vmul.f32 0.0, %v1622_v20 }
 0x127   : > { %584 = vrot.lane.b32.xlu0 %v522_v22, %s1535_s11  ;;  %586 = vrot.lane.b32.xlu1 %v523_v32, %s1535_s11 }
 0x12b   : > { %530 = vperm.xlu0 %1397, %v526_v37   ;;  %535 = vperm.xlu1 %1398, %v527_v38  }
 0x12f   : > { %1405 = vrot.lane.b32.xlu0 %v1404_v40, %s1537_s13  ;;  %1400 = vrot.lane.b32.xlu1 %v1530_v5, %s1533_s9 }
 0x133   : > { %1410 = vrot.lane.b32.xlu1 %v1409_v43, %s1538_s14 }
 0x181   : > { %v571_v44 = vpop.permute.xlu1 %570 }
 0x185   : > { %v577_v47 = vpop.permute.xlu0 %576 }
 0x189   : > { %v567_v48 = vpop.permute.xlu0 %566  ;;  %v583_v49 = vpop.permute.xlu1 %582 }
 0x18d   : > { %v565_v50 = vpop.permute.xlu0 %564  ;;  %v569_v51 = vpop.permute.xlu1 %568 }
 0x18e   : > { %v592_v19 = vsel %vm391_vm8, %v567_v48, %v569_v51  ;;  %v591_v54 = vsel %vm391_vm8, %v565_v50, %v567_v48 }
 0x18f   : > { %620 = vmatprep.subr.bf16.mxu0 %v592_v19 }
 0x190   : > { %621 = vmatpush1.bf16.msra.mxu0 %v591_v54 }
 0x191   : > { %v575_v26 = vpop.permute.xlu0 %574  ;;  %v573_v55 = vpop.permute.xlu1 %572 }
 0x192   : > { %v594_v56 = vsel %vm391_vm8, %v573_v55, %v575_v26  ;;  %v593_v58 = vsel %vm391_vm8, %v571_v44, %v573_v55 }
 0x193   : > { %622 = vmatprep.subr.bf16.mxu0 %v594_v56 }
 0x194   : > { %623 = vmatpush1.bf16.msra.mxu0 %v593_v58 }
 0x195   : > { %v579_v59 = vpop.permute.xlu0 %578  ;;  %v581_v60 = vpop.permute.xlu1 %580 }
 0x196   : > { %v596_v61 = vsel %vm391_vm8, %v579_v59, %v581_v60  ;;  %v595_v62 = vsel %vm391_vm8, %v577_v47, %v579_v59  ;;  %v707_v47 = vmul.f32 0.0, %v1651_v34  ;;  %v713_v59 = vmul.f32 0.0, %v1674_v45 }
 0x197   : > { %624 = vmatprep.subr.bf16.mxu0 %v596_v61 }
 0x198   : > { %625 = vmatpush1.bf16.msra.mxu0 %v595_v62 }
 0x199   : > { %v585_v63 = vpop.permute.xlu0 %584  ;;  %v587_v1 = vpop.permute.xlu1 %586 }
 0x19a   : > { %v597_v2 = vsel %vm391_vm8, %v583_v49, %v585_v63  ;;  %v598_v3 = vsel %vm391_vm8, %v585_v63, %v587_v1 }
 0x19b   : > { %1294 = vmatprep.subr.msk.bf16.mxu0 %vm611_vm0, %v598_v3  ;;  %v613_v6 = vsel %vm611_vm0, %v597_v2, 0 }
 0x19c   : > { %627 = vmatpush1.bf16.msra.mxu0 %v613_v6 }
 0x19f   : > { %1295 = vmatmul.mubr.msk.bf16.vlgmr.msra.gmra.mrb[0].mxu0 %vm607_vm1, %v1514_v7 }
 0x1a0   : > { %1187 = vmatprep.mubr.bf16.mxu0 %v1543_v11 }
 0x1aa   : > { %v531_v8 = vpop.permute.xlu0 %530  ;;  %v536_v14 = vpop.permute.xlu1 %535 }
 0x272   : > { %v652_v9 = vpop.f32.mrb[0].mxu0 }
 0x273   : > { %v653_v10 = vadd.f32 %v652_v9, %v531_v8  ;;  %v654_v13 = vpop.f32.mrb[1].mxu0  ;;  %v1401_v9 = vpop.permute.xlu1 %1400 }
 0x274   : > { %v655_v15 = vadd.f32 %v654_v13, %v531_v8  ;;  %v656_v16 = vpop.f32.mrb[2].mxu0 }
 0x275   : > { %v661_v12 = vmax.f32 %v653_v10, 0.0  ;;  %v657_v21 = vadd.f32 %v656_v16, %v536_v14  ;;  %v658_v24 = vpop.f32.mrb[3].mxu0  ;;  %v1406_v10 = vpop.permute.xlu0 %1405 }
 0x276   : > { %v662_v17 = vmax.f32 %v655_v15, 0.0  ;;  %v659_v27 = vadd.f32 %v658_v24, %v536_v14 }
 0x277   : > { %v663_v30 = vmax.f32 %v657_v21, 0.0  ;;  %v694_v31 = vmul.f32 %v661_v12, %v1647_v33  ;;  %v688_v22 = vmul.f32 %v661_v12, %v1628_v23  ;;  %v699_v11 = vmul.f32 %v1636_v28, %v661_v12 }
 0x278   : > { %v664_v32 = vmax.f32 %v659_v27, 0.0  ;;  %v1419_v37 = vpack.i.bf16 %v662_v17, %v661_v12  ;;  %v695_v38 = vmul.f32 %v1630_v25, %v662_v17  ;;  %v689_v39 = vmul.f32 %v1618_v18, %v662_v17 }
 0x279   : > { %v700_v40 = vmul.f32 %v662_v17, %v1657_v36  ;;  %v691_v41 = vmul.f32 %v663_v30, %v1628_v23  ;;  %v697_v43 = vmul.f32 %v663_v30, %v1647_v33  ;;  %v702_v19 = vmul.f32 %v1636_v28, %v663_v30 }
 0x27a   : > { %1420 = vrot.lane.b32.xlu0 %v1419_v37, %s1536_s12  ;;  %1415 = vrot.lane.b32.xlu1 %v1419_v37, %s1533_s9  ;;  %v1434_v20 = vpack.i.bf16 %v695_v38, %v694_v31  ;;  %v1424_v44 = vpack.i.bf16 %v664_v32, %v663_v30  ;;  %v1429_v48 = vpack.i.bf16 %v689_v39, %v688_v22  ;;  %v1402_v21 = vunpack.i.l.bf16 %v1401_v9 }
 0x27b   : > { %v1444_v49 = vpack.i.bf16 %v700_v40, %v699_v11  ;;  %v692_v50 = vmul.f32 %v1618_v18, %v664_v32  ;;  %v698_v51 = vmul.f32 %v1630_v25, %v664_v32  ;;  %v708_v23 = vmul.f32 %v1653_v35, %v663_v30 }
 0x27c   : > { %v705_v33 = vmul.f32 %v1653_v35, %v661_v12  ;;  %v706_v54 = vmul.f32 %v662_v17, %v1667_v42  ;;  %v703_v56 = vmul.f32 %v664_v32, %v1657_v36  ;;  %v1454_v34 = vpack.i.bf16 %v702_v19, %v701_v29 }
 0x27d   : > { %v1449_v26 = vpack.i.bf16 %v692_v50, %v691_v41  ;;  %v1464_v55 = vpack.i.bf16 %v698_v51, %v697_v43  ;;  %v1469_v18 = vpack.i.bf16 %v708_v23, %v707_v47  ;;  %v709_v28 = vmul.f32 %v664_v32, %v1667_v42 }
 0x27e   : > { %1435 = vrot.lane.b32.xlu1 %v1434_v20, %s1538_s14  ;;  %1425 = vrot.lane.b32.xlu0 %v1424_v44, %s1533_s9  ;;  %v1459_v58 = vpack.i.bf16 %v706_v54, %v705_v33  ;;  %v1474_v25 = vpack.i.bf16 %v701_v29, %v703_v56  ;;  %v711_v35 = vmul.f32 %v1676_v46, %v661_v12  ;;  %v1408_v50 = vunpack.i.h.bf16 %v1406_v10 }
 0x27f   : > { %v712_v60 = vmul.f32 %v662_v17, %v1689_v53  ;;  %v714_v61 = vmul.f32 %v1676_v46, %v663_v30  ;;  %v715_v36 = vmul.f32 %v664_v32, %v1689_v53  ;;  %v1494_v62 = vpack.i.bf16 %v707_v47, %v709_v28 }
 0x280   : > { %v683_v63 = vmul.f32 %v1684_v52, %v662_v17  ;;  %v686_v1 = vmul.f32 %v1684_v52, %v664_v32  ;;  %v682_v6 = vmul.f32 %v661_v12, %v1709_v4  ;;  %v685_v7 = vmul.f32 %v663_v30, %v1709_v4 }
 0x281   : > { %v1499_v42 = vpack.i.bf16 %v712_v60, %v711_v35  ;;  %v1504_v2 = vpack.i.bf16 %v714_v61, %v713_v59  ;;  %v1509_v45 = vpack.i.bf16 %v713_v59, %v715_v36  ;;  %v1484_v52 = vpack.i.bf16 %v663_v30, %v1530_v5 }
 0x282   : > { %1440 = vrot.lane.b32.xlu1 %v1424_v44, %s1536_s12  ;;  %1430 = vrot.lane.b32.xlu0 %v1429_v48, %s1537_s13  ;;  %v927_v3 = vpack.c.bf16 %v686_v1, %v683_v63  ;;  %v926_v46 = vpack.c.bf16 %v685_v7, %v682_v6  ;;  %v1489_v53 = vpack.i.bf16 %v1530_v5, %v664_v32  ;;  %v681_v4 = vmul.f32 0.0, %v1692_v57  ;;  %v1830_v5 = vpop.permute.xlu1 %1410 }
 0x283   : > { %v1403_v57 = vunpack.i.h.bf16 %v1401_v9  ;;  %v1407_v51 = vunpack.i.l.bf16 %v1406_v10  ;;  %v1413_v60 = vunpack.i.h.bf16 %v1830_v5 }
 0x284   : > { %v925_v8 = vpack.c.bf16 %v681_v4, %v681_v4 }
 0x286   : > { %1445 = vrot.lane.b32.xlu0 %v1444_v49, %s1539_s15  ;;  %1450 = vrot.lane.b32.xlu1 %v1449_v26, %s1537_s13 }
 0x28a   : > { %1465 = vrot.lane.b32.xlu0 %v1464_v55, %s1538_s14  ;;  %1455 = vrot.lane.b32.xlu1 %v1454_v34, %s1539_s15 }
 0x28e   : > { %1470 = vrot.lane.b32.xlu0 %v1469_v18, %s1541_s17  ;;  %1460 = vrot.lane.b32.xlu1 %v1459_v58, %s1541_s17 }
 0x292   : > { %1475 = vrot.lane.b32.xlu0 %v1474_v25, %s1539_s15  ;;  %1485 = vrot.lane.b32.xlu1 %v1484_v52, %s1540_s16 }
 0x296   : > { %1480 = vrot.lane.b32.xlu0 %v1419_v37, %s1540_s16  ;;  %1495 = vrot.lane.b32.xlu1 %v1494_v62, %s1541_s17 }
 0x29a   : > { %1490 = vrot.lane.b32.xlu0 %v1489_v53, %s1540_s16  ;;  %1500 = vrot.lane.b32.xlu1 %v1499_v42, %s1542_s18  ;;  %v1412_v42 = vunpack.i.l.bf16 %v1830_v5  ;;  %s1304_s16 = sshll.u32 %s1979_s25, 2 }
 0x29b   : > { %s278_s19 = scalar_lea.vmem %s1977_s7, %s1304_s16 }
 0x29e   : > { %1505 = vrot.lane.b32.xlu0 %v1504_v2, %s1542_s18  ;;  %1510 = vrot.lane.b32.xlu1 %v1509_v45, %s1542_s18 }
 0x2a2   : > { %1002 = vrot.lane.b32.xlu0 %v925_v8, %s1535_s11  ;;  %1006 = vrot.lane.b32.xlu1 %v927_v3, %s1535_s11 }
 0x2a6   : > { %1004 = vrot.lane.b32.xlu0 %v926_v46, %s1535_s11 }
 0x2ec   : > { %v1832_v13 = vpop.permute.xlu0 %1420  ;;  %v1416_v14 = vpop.permute.xlu1 %1415 }
 0x2ed   : > { %v1417_v15 = vunpack.i.l.bf16 %v1416_v14  ;;  %v1418_v24 = vunpack.i.h.bf16 %v1416_v14  ;;  %v1423_v29 = vunpack.i.h.bf16 %v1832_v13  ;;  %v1422_v30 = vunpack.i.l.bf16 %v1832_v13 }
 0x2ef   : > { %v735_v22 = vsel %vm355_vm5, %v1402_v21, %v1417_v15  ;;  %v809_v20 = vsel %vm329_vm9, %v1422_v30, %v1423_v29  ;;  %v736_v26 = vsel %vm355_vm5, %v1417_v15, %v1418_v24 }
 0x2f0   : > { %v1426_v16 = vpop.permute.xlu0 %1425  ;;  %v1834_v12 = vpop.permute.xlu1 %1435 }
 0x2f1   : > { %v1428_v17 = vunpack.i.h.bf16 %v1426_v16  ;;  %v1427_v27 = vunpack.i.l.bf16 %v1426_v16  ;;  %v1438_v25 = vunpack.i.h.bf16 %v1834_v12  ;;  %v1437_v61 = vunpack.i.l.bf16 %v1834_v12 }
 0x2f3   : > { %v930_v31 = vpack.c.bf16 %v1428_v17, %v1418_v24  ;;  %v737_v11 = vsel %vm355_vm5, %v1403_v57, %v1427_v27  ;;  %v738_v23 = vsel %vm355_vm5, %v1427_v27, %v1428_v17  ;;  %v791_v6 = vsel %vm437_vm10, %v1412_v42, %v1437_v61 }
 0x2f4   : > { %v1431_v32 = vpop.permute.xlu0 %1430  ;;  %v1441_v37 = vpop.permute.xlu1 %1440  ;;  %v928_v38 = vpack.c.bf16 %v737_v11, %v735_v22  ;;  %v929_v58 = vpack.c.bf16 %v738_v23, %v736_v26  ;;  %v792_v27 = vsel %vm437_vm10, %v1437_v61, %v1438_v25 }
 0x2f5   : > { %v1443_v39 = vunpack.i.h.bf16 %v1441_v37  ;;  %v1442_v40 = vunpack.i.l.bf16 %v1441_v37  ;;  %1012 = vrot.lane.b32.xlu0 %v930_v31, %s1535_s11  ;;  %v1432_v41 = vunpack.i.l.bf16 %v1431_v32  ;;  %v1433_v35 = vunpack.i.h.bf16 %v1431_v32 }
 0x2f6   : > { %1008 = vrot.lane.b32.xlu1 %v928_v38, %s1535_s11 }
 0x2f7   : > { %v939_v43 = vpack.c.bf16 %v1443_v39, %v1423_v29  ;;  %v810_v44 = vsel %vm329_vm9, %v1442_v40, %v1443_v39  ;;  %v763_v33 = vsel %vm422_vm11, %v1407_v51, %v1432_v41  ;;  %v764_v3 = vsel %vm422_vm11, %v1432_v41, %v1433_v35 }
 0x2f8   : > { %v1844_v47 = vpop.permute.xlu0 %1445  ;;  %v1451_v48 = vpop.permute.xlu1 %1450  ;;  %v938_v49 = vpack.c.bf16 %v810_v44, %v809_v20  ;;  %v937_v9 = vpack.c.bf16 %v1442_v40, %v1422_v30 }
 0x2f9   : > { %v1452_v19 = vunpack.i.l.bf16 %v1451_v48  ;;  %v1453_v55 = vunpack.i.h.bf16 %v1451_v48  ;;  %v1447_v8 = vunpack.i.l.bf16 %v1844_v47  ;;  %v1448_v29 = vunpack.i.h.bf16 %v1844_v47 }
 0x2fa   : > { %1028 = vrot.lane.b32.xlu0 %v938_v49, %s1535_s11  ;;  %1030 = vrot.lane.b32.xlu1 %v939_v43, %s1535_s11 }
 0x2fb   : > { %v765_v54 = vsel %vm422_vm11, %v1408_v50, %v1452_v19  ;;  %v933_v62 = vpack.c.bf16 %v1453_v55, %v1433_v35  ;;  %v766_v2 = vsel %vm422_vm11, %v1452_v19, %v1453_v55  ;;  %v835_v26 = vsel %vm460_vm12, %v1447_v8, %v1448_v29 }
 0x2fc   : > { %v1466_v56 = vpop.permute.xlu0 %1465  ;;  %v1852_v34 = vpop.permute.xlu1 %1455  ;;  %v931_v18 = vpack.c.bf16 %v765_v54, %v763_v33  ;;  %v932_v53 = vpack.c.bf16 %v766_v2, %v764_v3  ;;  %v1517_v2 = vld [vmem:[%s1973_s3 + $0x4] ss:$8 sps:$4 sm:$0xff]  }
 0x2fd   : > { %v1468_v28 = vunpack.i.h.bf16 %v1466_v56  ;;  %v1467_v59 = vunpack.i.l.bf16 %v1466_v56  ;;  %v1458_v7 = vunpack.i.h.bf16 %v1852_v34  ;;  %v1457_v21 = vunpack.i.l.bf16 %v1852_v34  ;;  %1298 = vmatprep.mubr.msk.bf16.mxu1 %vm1092_vm2, %v1517_v2 }
 0x2fe   : > { %1014 = vrot.lane.b32.xlu0 %v931_v18, %s1535_s11  ;;  %1010 = vrot.lane.b32.xlu1 %v929_v58, %s1535_s11 }
 0x2ff   : > { %v936_v36 = vpack.c.bf16 %v1468_v28, %v1438_v25  ;;  %v793_v45 = vsel %vm437_vm10, %v1413_v60, %v1467_v59  ;;  %v940_v10 = vpack.c.bf16 %v1458_v7, %v1447_v8  ;;  %v794_v12 = vsel %vm437_vm10, %v1467_v59, %v1468_v28 }
 0x300   : > { %v1859_v63 = vpop.permute.xlu0 %1470  ;;  %v1861_v1 = vpop.permute.xlu1 %1460  ;;  %v934_v4 = vpack.c.bf16 %v793_v45, %v791_v6  ;;  %v935_v11 = vpack.c.bf16 %v794_v12, %v792_v27  ;;  %v836_v41 = vsel %vm460_vm12, %v1448_v29, %v1457_v21 }
 0x301   : > { %v1473_v5 = vunpack.i.h.bf16 %v1859_v63  ;;  %v1462_v13 = vunpack.i.l.bf16 %v1861_v1  ;;  %v1463_v40 = vunpack.i.h.bf16 %v1861_v1  ;;  %v1472_v33 = vunpack.i.l.bf16 %v1859_v63 }
 0x302   : > { %1024 = vrot.lane.b32.xlu0 %v936_v36, %s1535_s11  ;;  %1018 = vrot.lane.b32.xlu1 %v933_v62, %s1535_s11 }
 0x303   : > { %v943_v30 = vpack.c.bf16 %v1473_v5, %v1462_v13  ;;  %v863_v54 = vsel %vm475_vm13, %v1462_v13, %v1463_v40  ;;  %v864_v36 = vsel %vm475_vm13, %v1463_v40, %v1472_v33  ;;  %v955_v13 = vld [vmem:[%s1974_s4 + $0x8] sm:$0xff] }
 0x304   : > { %v1476_v46 = vpop.permute.xlu0 %1475  ;;  %v1871_v52 = vpop.permute.xlu1 %1485 }
 0x305   : > { %v1478_v57 = vunpack.i.h.bf16 %v1476_v46  ;;  %v1477_v16 = vunpack.i.l.bf16 %v1476_v46  ;;  %v1488_v32 = vunpack.i.h.bf16 %v1871_v52  ;;  %v1487_v55 = vunpack.i.l.bf16 %v1871_v52 }
 0x306   : > { %1016 = vrot.lane.b32.xlu0 %v932_v53, %s1535_s11  ;;  %1020 = vrot.lane.b32.xlu1 %v934_v4, %s1535_s11 }
 0x307   : > { %v838_v39 = vsel %vm460_vm12, %v1477_v16, %v1478_v57  ;;  %v837_v19 = vsel %vm460_vm12, %v1458_v7, %v1477_v16 }
 0x308   : > { %v1878_v14 = vpop.permute.xlu0 %1480  ;;  %v1496_v15 = vpop.permute.xlu1 %1495  ;;  %v942_v47 = vpack.c.bf16 %v838_v39, %v836_v41  ;;  %v941_v18 = vpack.c.bf16 %v837_v19, %v835_v26 }
 0x309   : > { %v1483_v24 = vunpack.i.h.bf16 %v1878_v14  ;;  %v1482_v17 = vunpack.i.l.bf16 %v1878_v14  ;;  %v1497_v37 = vunpack.i.l.bf16 %v1496_v15  ;;  %v1498_v49 = vunpack.i.h.bf16 %v1496_v15  ;;  %v954_v14 = vld [vmem:[%s1974_s4] sm:$0xff] }
 0x30a   : > { %1026 = vrot.lane.b32.xlu0 %v937_v9, %s1535_s11  ;;  %1032 = vrot.lane.b32.xlu1 %v940_v10, %s1535_s11  ;;  %v1146_v15 = vld [vmem:[%s1976_s6] sm:$0x3] }
 0x30b   : > { %v887_v43 = vsel %vm488_vm14, %v1482_v17, %v1483_v24  ;;  %v865_v51 = vsel %vm475_vm13, %v1473_v5, %v1497_v37  ;;  %v866_v59 = vsel %vm475_vm13, %v1497_v37, %v1498_v49  ;;  %v888_v61 = vsel %vm488_vm14, %v1483_v24, %v1487_v55 }
 0x30c   : > { %v1491_v31 = vpop.permute.xlu0 %1490  ;;  %v1888_v22 = vpop.permute.xlu1 %1500  ;;  %v944_v34 = vpack.c.bf16 %v865_v51, %v863_v54  ;;  %v945_v42 = vpack.c.bf16 %v866_v59, %v864_v36  ;;  %v946_v4 = vpack.c.bf16 %v1488_v32, %v1482_v17 }
 0x30d   : > { %v1492_v38 = vunpack.i.l.bf16 %v1491_v31  ;;  %v1493_v50 = vunpack.i.h.bf16 %v1491_v31  ;;  %v1503_v35 = vunpack.i.h.bf16 %v1888_v22  ;;  %v1502_v60 = vunpack.i.l.bf16 %v1888_v22 }
 0x30e   : > { %1038 = vrot.lane.b32.xlu0 %v943_v30, %s1535_s11  ;;  %1022 = vrot.lane.b32.xlu1 %v935_v11, %s1535_s11 }
 0x30f   : > { %v889_v20 = vsel %vm488_vm14, %v1488_v32, %v1492_v38  ;;  %v890_v28 = vsel %vm488_vm14, %v1492_v38, %v1493_v50  ;;  %v915_v52 = vsel %vm503_vm15, %v1502_v60, %v1503_v35 }
 0x310   : > { %v1506_v44 = vpop.permute.xlu0 %1505  ;;  %v947_v48 = vpack.c.bf16 %v889_v20, %v887_v43  ;;  %v1511_v23 = vpop.permute.xlu1 %1510  ;;  %v948_v1 = vpack.c.bf16 %v890_v28, %v888_v61 }
 0x311   : > { %v1508_v58 = vunpack.i.h.bf16 %v1506_v44  ;;  %v1512_v25 = vunpack.i.l.bf16 %v1511_v23  ;;  %v1507_v7 = vunpack.i.l.bf16 %v1506_v44  ;;  %v1513_v46 = vunpack.i.h.bf16 %v1511_v23 }
 0x312   : > { %1036 = vrot.lane.b32.xlu0 %v942_v47, %s1535_s11  ;;  %1046 = vrot.lane.b32.xlu1 %v947_v48, %s1535_s11 }
 0x313   : > { %v917_v6 = vsel %vm503_vm15, %v1508_v58, %v1512_v25  ;;  %v916_v8 = vsel %vm503_vm15, %v1503_v35, %v1507_v7  ;;  %v918_v9 = vsel %vm503_vm15, %v1512_v25, %v1513_v46  ;;  %v949_v10 = vpack.c.bf16 %v1508_v58, %v1502_v60  ;;  %v1515_v60 = vld [vmem:[%s1973_s3] ss:$8 sps:$4 sm:$0xff]  }
 0x314   : > { %v1003_v56 = vpop.permute.xlu0 %1002  ;;  %v1007_v62 = vpop.permute.xlu1 %1006  ;;  %v950_v53 = vpack.c.bf16 %v917_v6, %v915_v52  ;;  %v951_v5 = vpack.c.bf16 %v918_v9, %v916_v8  ;;  %v1143_v9 = vld [vmem:[%s1975_s5] sm:$0x1] }
 0x316   : > { %1040 = vrot.lane.b32.xlu0 %v944_v34, %s1535_s11  ;;  %1034 = vrot.lane.b32.xlu1 %v941_v18, %s1535_s11 }
 0x318   : > { %v1005_v63 = vpop.permute.xlu0 %1004 }
 0x319   : > { %v1057_v45 = vsel %vm391_vm8, %v1005_v63, %v1007_v62  ;;  %v1056_v3 = vsel %vm391_vm8, %v1003_v56, %v1005_v63 }
 0x31a   : > { %1096 = vmatprep.subr.bf16.mxu1 %v1057_v45  ;;  %1048 = vrot.lane.b32.xlu0 %v948_v1, %s1535_s11 }
 0x31b   : > { %1042 = vrot.lane.b32.xlu1 %v945_v42, %s1535_s11  ;;  %1097 = vmatpush1.bf16.msra.mxu1 %v1056_v3 }
 0x31e   : > { %1052 = vrot.lane.b32.xlu0 %v950_v53, %s1535_s11 }
 0x31f   : > { %1044 = vrot.lane.b32.xlu1 %v946_v4, %s1535_s11 }
 0x322   : > { %1050 = vrot.lane.b32.xlu0 %v949_v10, %s1535_s11 }
 0x323   : > { %1054 = vrot.lane.b32.xlu1 %v951_v5, %s1535_s11 }
 0x326   : > { %963 = vperm.xlu0 %1397, %v955_v13  }
 0x327   : > { %958 = vperm.xlu1 %1398, %v954_v14  }
 0x32b   : > { %1149 = vperm.xlu1 %1398, %v1146_v15  }
 0x367   : > { %v1013_v57 = vpop.permute.xlu0 %1012 }
 0x368   : > { %v1009_v16 = vpop.permute.xlu1 %1008 }
 0x36c   : > { %v1029_v12 = vpop.permute.xlu0 %1028  ;;  %v1031_v21 = vpop.permute.xlu1 %1030 }
 0x36d   : > { %v1065_v44 = vsel %vm391_vm8, %v1029_v12, %v1031_v21 }
 0x370   : > { %v1015_v24 = vpop.permute.xlu0 %1014  ;;  %v1011_v17 = vpop.permute.xlu1 %1010 }
 0x371   : > { %v1059_v27 = vsel %vm391_vm8, %v1011_v17, %v1013_v57  ;;  %v1058_v29 = vsel %vm391_vm8, %v1009_v16, %v1011_v17 }
 0x372   : > { %1098 = vmatprep.subr.bf16.mxu1 %v1059_v27 }
 0x373   : > { %1099 = vmatpush1.bf16.msra.mxu1 %v1058_v29 }
 0x374   : > { %v1025_v30 = vpop.permute.xlu0 %1024  ;;  %v1019_v31 = vpop.permute.xlu1 %1018 }
 0x378   : > { %v1017_v22 = vpop.permute.xlu0 %1016  ;;  %v1021_v11 = vpop.permute.xlu1 %1020 }
 0x379   : > { %v1061_v32 = vsel %vm391_vm8, %v1017_v22, %v1019_v31  ;;  %v1060_v37 = vsel %vm391_vm8, %v1015_v24, %v1017_v22  ;;  %v1209_v24 = vshrl.u32 %v280_v0, 7 }
 0x37a   : > { %1100 = vmatprep.subr.bf16.mxu1 %v1061_v32 }
 0x37b   : > { %1101 = vmatpush1.bf16.msra.mxu1 %v1060_v37  ;;  %vm1210_vm4 = vcmp.eq.s32.totalorder %v1209_v24, 0 }
 0x37c   : > { %v1027_v38 = vpop.permute.xlu0 %1026  ;;  %v1033_v39 = vpop.permute.xlu1 %1032 }
 0x37d   : > { %v1064_v49 = vsel %vm391_vm8, %v1027_v38, %v1029_v12 }
 0x380   : > { %v1039_v40 = vpop.permute.xlu0 %1038  ;;  %v1023_v41 = vpop.permute.xlu1 %1022 }
 0x381   : > { %v1063_v43 = vsel %vm391_vm8, %v1023_v41, %v1025_v30  ;;  %v1062_v20 = vsel %vm391_vm8, %v1021_v11, %v1023_v41 }
 0x382   : > { %1102 = vmatprep.subr.bf16.mxu1 %v1063_v43 }
 0x383   : > { %1103 = vmatpush1.bf16.msra.mxu1 %v1062_v20 }
 0x384   : > { %v1037_v47 = vpop.permute.xlu0 %1036  ;;  %1104 = vmatprep.subr.bf16.mxu1 %v1065_v44  ;;  %v1047_v48 = vpop.permute.xlu1 %1046 }
 0x387   : > { %1105 = vmatpush1.bf16.msra.mxu1 %v1064_v49 }
 0x388   : > { %v1041_v50 = vpop.permute.xlu0 %1040  ;;  %v1035_v51 = vpop.permute.xlu1 %1034 }
 0x389   : > { %v1067_v19 = vsel %vm391_vm8, %v1035_v51, %v1037_v47  ;;  %v1066_v23 = vsel %vm391_vm8, %v1033_v39, %v1035_v51  ;;  %v1068_v55 = vsel %vm391_vm8, %v1039_v40, %v1041_v50 }
 0x38a   : > { %1106 = vmatprep.subr.bf16.mxu1 %v1067_v19 }
 0x38b   : > { %1107 = vmatpush1.bf16.msra.mxu1 %v1066_v23 }
 0x38c   : > { %v1049_v33 = vpop.permute.xlu0 %1048 }
 0x38d   : > { %v1043_v54 = vpop.permute.xlu1 %1042  ;;  %v1071_v34 = vsel %vm391_vm8, %v1047_v48, %v1049_v33 }
 0x38e   : > { %v1069_v26 = vsel %vm391_vm8, %v1041_v50, %v1043_v54 }
 0x38f   : > { %1108 = vmatprep.subr.bf16.mxu1 %v1069_v26 }
 0x390   : > { %1109 = vmatpush1.bf16.msra.mxu1 %v1068_v55  ;;  %v1053_v56 = vpop.permute.xlu0 %1052 }
 0x391   : > { %1110 = vmatprep.subr.bf16.mxu1 %v1071_v34  ;;  %v1045_v18 = vpop.permute.xlu1 %1044 }
 0x392   : > { %v1070_v58 = vsel %vm391_vm8, %v1045_v18, %v1047_v48 }
 0x394   : > { %1111 = vmatpush1.bf16.msra.mxu1 %v1070_v58  ;;  %v1051_v25 = vpop.permute.xlu0 %1050 }
 0x395   : > { %v1055_v28 = vpop.permute.xlu1 %1054  ;;  %v1072_v59 = vsel %vm391_vm8, %v1051_v25, %v1053_v56 }
 0x396   : > { %v1073_v35 = vsel %vm391_vm8, %v1053_v56, %v1055_v28 }
 0x397   : > { %1112 = vmatprep.subr.bf16.mxu1 %v1073_v35 }
 0x398   : > { %1113 = vmatpush1.bf16.msra.mxu1 %v1072_v59 }
 0x39b   : > { %1129 = vmatmul.mubr.bf16.vlgmr.msra.gmra.mrb[0].mxu1 %v1515_v60 }
 0x3a5   : > { %v964_v1 = vpop.permute.xlu0 %963 }
 0x3a6   : > { %v959_v61 = vpop.permute.xlu1 %958 }
 0x3aa   : > { %v1150_v10 = vpop.permute.xlu1 %1149 }
 0x46e   : > { %v1130_v36 = vpop.f32.mrb[0].mxu1 }
 0x46f   : > { %v1131_v62 = vadd.f32 %v1130_v36, %v959_v61  ;;  %v1132_v63 = vpop.f32.mrb[1].mxu1 }
 0x470   : > { %v1133_v42 = vadd.f32 %v1132_v63, %v959_v61  ;;  %v1134_v2 = vpop.f32.mrb[2].mxu1 }
 0x471   : > { %v1135_v45 = vadd.f32 %v1134_v2, %v964_v1  ;;  %v1136_v3 = vpop.f32.mrb[3].mxu1  ;;  %v1139_v7 = vmax.f32 %v1131_v62, 0.0 }
 0x472   : > { %v1137_v6 = vadd.f32 %v1136_v3, %v964_v1  ;;  %v1140_v52 = vmax.f32 %v1133_v42, 0.0 }
 0x473   : > { %v1141_v46 = vmax.f32 %v1135_v45, 0.0 }
 0x474   : > { %v1142_v53 = vmax.f32 %v1137_v6, 0.0 }
 0x475   : > { %v1144_v4 = vpack.c.bf16 %v1141_v46, %v1139_v7 }
 0x476   : > { %v1145_v8 = vpack.c.bf16 %v1142_v53, %v1140_v52 }
 0x478   : > { %1155 = vmatprep.subr.bf16.mxu0 %v1145_v8 }
 0x479   : > { %1156 = vmatpush1.bf16.msra.mxu0 %v1144_v4 }
 0x47c   : > { %1299 = vmatmul.mubr.msk.bf16.vlgmr.msra.gmra.mrb[4].mxu0 %vm1092_vm2, %v1143_v9 }
 0x54f   : > { %v1189_v5 = vpop.f32.mrb[4].mxu0 }
 0x550   : > { %v1190_v13 = vadd.f32 %v1189_v5, %v1150_v10  ;;  %v1191_v14 = vpop.f32.mrb[5].mxu0 }
 0x551   : > { %v1192_v15 = vadd.f32 %v1191_v14, %v1150_v10  ;;  %v1193_v57 = vpop.f32.mrb[6].mxu0 }
 0x552   : > { %v1200_v16 = vmul.f32 1.442695, %v1190_v13  ;;  %v1194_v12 = vpop.f32.mrb[7].mxu0  ;;  %v1198_v17 = vadd.f32 1.0, %v1190_v13  ;;  %vm1196_vm3 = vcmp.gt.f32.partialorder %v1190_v13, 0.0 }
 0x553   : > { %v1202_v21 = vmul.f32 1.442695, %v1192_v15  ;;  %v1199_v29 = vadd.f32 1.0, %v1192_v15  ;;  %vm1197_vm5 = vcmp.gt.f32.partialorder %v1192_v15, 0.0 }
 0x554   : > { %1518 = vpow2.f32 %v1200_v16 }
 0x555   : > { %1520 = vpow2.f32 %v1202_v21 }
 0x55e   : > { %v1519_v27 = vpop.eup %1518 }
 0x55f   : > { %v1521_v30 = vpop.eup %1520  ;;  %v1204_v31 = vsel %vm1196_vm3, %v1198_v17, %v1519_v27 }
 0x560   : > { %v1206_v22 = vadd.f32 1e-10, %v1204_v31  ;;  %v1205_v11 = vsel %vm1197_vm5, %v1199_v29, %v1521_v30 }
 0x561   : > { %v1207_v32 = vadd.f32 1e-10, %v1205_v11 }
 0x562   : > { %v1211_v37 = vsel %vm1210_vm4, %v1190_v13, %v1206_v22 }
 0x563   : > { %v1212_v38 = vsel %vm1210_vm4, %v1192_v15, %v1207_v32 }
 0x564   : > { %v1215_v39 = vcombine.low %v1211_v37, %v1212_v38 }
 0x566   : > { %1300 = vst.sshfl [vmem:[%s278_s19] sm:$0x33 pattern:$0x76325410] %v1215_v39 }
 0x567 PF: > { %s17_s24 = sadd.s32 1, %s1528_s24  }
 0x568   : > { %p14_p4 = scmp.ge.s32.totalorder %s17_s24, 4  }
 0x56a   :  { %16 = sbr.rel (!%p14_p4) target bundleno = 1 (0x1), region = 78 }

</bundles_post_ra>
